<compile_context>
chip_gen: v5e
topology: v5e:2x2
jax: 0.10.0
libtpu: 0.0.40
codegen_flags: <defaults>
</compile_context>

<pallas_src>
import functools

import jax
import jax.numpy as jnp
from jax.experimental import pallas as pl
from jax.experimental.pallas import tpu as pltpu


def _gaussian_smearing_kernel(dist_ref, offset_ref, out_ref, *, coeff):
    """One grid step: a lane-dense (G, tn) slab of the output.

    dist_ref:   (1, tn)  distances; N rides the 128-wide lane axis.
    offset_ref: (G, 1)   full Gaussian-center column (resident every step).
    out_ref:    (G, tn)  lane-dense output block -> unmasked full-width vst.
    """
    d = dist_ref[...] - offset_ref[...]           # broadcast -> (G, tn), f32
    # coeff is a compile-time immediate (one extra VALU mul; exp goes to the
    # EUP slot, so the elementwise work stays off the store/HBM critical path).
    val = jnp.exp((d * d) * coeff)
    out_ref[...] = val.astype(out_ref.dtype)


def gaussian_smearing(dist, offset, coeff, *, tn=16384,
                      out_dtype=jnp.float32, ng_output=True):
    """exp(coeff * (dist.reshape(-1, 1) - offset.reshape(1, -1)) ** 2).

    dist:      any-shape float array (flattened; N = dist.size).
    offset:    (G,) Gaussian centers.
    coeff:     python float (baked in as a constant; changing it recompiles).
    tn:        distances per grid step (lane-tile width, multiple of 128).
    out_dtype: jnp.float32 (default, matches PyTorch) or jnp.bfloat16 to halve
               HBM writeback on v6e/v7x (compute stays f32 for v5e safety).
    ng_output: True  -> return (N, G) like the PyTorch module (one extra XLA
                        transpose pass over the output).
               False -> return the kernel-native (G, N), no extra HBM pass.
    """
    dist_row = dist.reshape(1, -1).astype(jnp.float32)        # (1, N)
    offset_col = offset.reshape(-1, 1).astype(jnp.float32)    # (G, 1)
    n = dist_row.shape[1]
    g = offset_col.shape[0]

    # Lane tile: multiple of 128, no larger than the (rounded-up) problem.
    tn = max(128, (int(tn) // 128) * 128)
    tn = min(tn, pl.cdiv(n, 128) * 128)
    # Prefer >= ~8 grid steps (megacore sharding + pipelining) for large N,
    # without dropping below a 1024-lane tile.
    if pl.cdiv(n, tn) < 8:
        tn = min(tn, max(1024, pl.cdiv(pl.cdiv(n, 8), 128) * 128))

    # Partial last block is clipped by Pallas: no pad, no out[:n] copy.
    grid = (pl.cdiv(n, tn),)

    kernel = functools.partial(_gaussian_smearing_kernel, coeff=float(coeff))

    out_gn = pl.pallas_call(
        kernel,
        out_shape=jax.ShapeDtypeStruct((g, n), out_dtype),
        grid_spec=pltpu.PrefetchScalarGridSpec(
            num_scalar_prefetch=0,
            grid=grid,
            in_specs=[
                pl.BlockSpec((1, tn), lambda i: (0, i)),   # dist lane-tile
                pl.BlockSpec((g, 1), lambda i: (0, 0)),    # full offset column
            ],
            out_specs=pl.BlockSpec((g, tn), lambda i: (0, i)),
        ),
        compiler_params=pltpu.CompilerParams(
            dimension_semantics=("parallel",),
            # 2 x (G * tn * 4 B) double-buffered output blocks + tiny inputs
            # ~= 7 MiB at the defaults; 32 MiB is safe on v5e/v6e (128 MiB
            # VMEM) and on v7x (64 MiB VMEM).
            vmem_limit_bytes=32 * 1024 * 1024,
        ),
    )(dist_row, offset_col)

    if ng_output:
        return out_gn.T    # (N, G) -- matches the PyTorch forward
    return out_gn          # (G, N) -- lane-dense, skips the transpose pass


class GaussianSmearingJax:
    """Parameter-compatible re-implementation of the PyTorch module."""

    def __init__(self, start=0.0, stop=10.0, num_gaussians=50):
        self.offset = jnp.linspace(start, stop, num_gaussians,
                                   dtype=jnp.float32)
        step = float(self.offset[1] - self.offset[0])
        self.coeff = -0.5 / step ** 2

    def __call__(self, dist):
        return gaussian_smearing(dist, self.offset, self.coeff)


if __name__ == "__main__":
    key = jax.random.PRNGKey(0)
    n = 300                       # small; deliberately NOT a multiple of 128
    dist = jax.random.uniform(key, (n,), dtype=jnp.float32,
                              minval=0.0, maxval=10.0)

    module = GaussianSmearingJax(start=0.0, stop=10.0, num_gaussians=50)

    # Reference (same math as the PyTorch forward), plain XLA.
    ref = jnp.exp(module.coeff *
                  (dist.reshape(-1, 1) - module.offset.reshape(1, -1)) ** 2)

    # 1) Default path: (N, G) f32 output, single clipped lane tile.
    out = jax.block_until_ready(module(dist))
    assert out.shape == (n, 50), out.shape
    assert jnp.allclose(out, ref, atol=1e-5, rtol=1e-5)

    # 2) Multi-step grid (tn=128 -> 3 grid steps incl. a clipped last block).
    out_multi = jax.block_until_ready(
        gaussian_smearing(dist, module.offset, module.coeff, tn=128))
    assert jnp.allclose(out_multi, ref, atol=1e-5, rtol=1e-5)

    # 3) bf16-output option (halves writeback on v6e/v7x); compute stays f32.
    out_bf16 = jax.block_until_ready(
        gaussian_smearing(dist, module.offset, module.coeff,
                          out_dtype=jnp.bfloat16))
    assert out_bf16.dtype == jnp.bfloat16
    assert jnp.allclose(out_bf16.astype(jnp.float32), ref,
                        atol=2e-2, rtol=2e-2)

    print("KERNEL_OK")
</pallas_src>

<mosaic_0001>
module attributes {stable_mosaic.version = 11 : i64} {
  func.func @_gaussian_smearing_kernel(%arg0: i32, %arg1: memref<1x384xf32, #tpu.memory_space<vmem>>, %arg2: memref<50x1xf32, #tpu.memory_space<vmem>>, %arg3: memref<50x384xf32, #tpu.memory_space<vmem>>) attributes {dimension_semantics = [#tpu.dimension_semantics<parallel>], iteration_bounds = array<i64: 1>, scalar_prefetch = 0 : i64, scratch_operands = 0 : i64, tpu.core_type = #tpu.core_type<tc>, window_params = [{transform_indices = @transform_0, window_bounds = array<i64: 1, 384>}, {pipeline_mode = #tpu.pipeline_mode<synchronous>, transform_indices = @transform_1, window_bounds = array<i64: 50, 1>}, {transform_indices = @transform_2, window_bounds = array<i64: 50, 384>}]} {
    %c0 = arith.constant 0 : index
    %c0_0 = arith.constant 0 : index
    %0 = vector.load %arg1[%c0, %c0_0] : memref<1x384xf32, #tpu.memory_space<vmem>>, vector<1x384xf32>
    %c0_1 = arith.constant 0 : index
    %c0_2 = arith.constant 0 : index
    %1 = vector.load %arg2[%c0_1, %c0_2] : memref<50x1xf32, #tpu.memory_space<vmem>>, vector<50x1xf32>
    %2 = vector.broadcast %0 : vector<1x384xf32> to vector<50x384xf32>
    %3 = vector.broadcast %1 : vector<50x1xf32> to vector<50x384xf32>
    %4 = arith.subf %2, %3 : vector<50x384xf32>
    %5 = arith.mulf %4, %4 : vector<50x384xf32>
    %cst = arith.constant -12.0050011 : f32
    %6 = vector.broadcast %cst : f32 to vector<50x384xf32>
    %7 = arith.mulf %5, %6 : vector<50x384xf32>
    %8 = math.exp %7 : vector<50x384xf32>
    %c0_3 = arith.constant 0 : index
    %c0_4 = arith.constant 0 : index
    %9 = vector.load %arg3[%c0_3, %c0_4] : memref<50x384xf32, #tpu.memory_space<vmem>>, vector<50x384xf32>
    tpu.vector_store %arg3[%c0_3, %c0_4], %8 {strides = array<i32>} : memref<50x384xf32, #tpu.memory_space<vmem>>, vector<50x384xf32>,
    return
  }
  func.func @transform_0(%arg0: i32) -> (i32, i32) {
    %c0_i32 = arith.constant 0 : i32
    %c0_i32_0 = arith.constant 0 : i32
    return %c0_i32, %arg0 : i32, i32
  }
  func.func @transform_1(%arg0: i32) -> (i32, i32) {
    %c0_i32 = arith.constant 0 : i32
    %c0_i32_0 = arith.constant 0 : i32
    %c0_i32_1 = arith.constant 0 : i32
    return %c0_i32, %c0_i32_0 : i32, i32
  }
  func.func @transform_2(%arg0: i32) -> (i32, i32) {
    %c0_i32 = arith.constant 0 : i32
    %c0_i32_0 = arith.constant 0 : i32
    return %c0_i32, %arg0 : i32, i32
  }
}

</mosaic_0001>

<bundles_post_ra>
// kernel: tpu_custom_call.1
= control target key start
LH: loop header
LB: loop body
LE: loop exit
PB: predicated region body
PF: predicated region fallthrough
CT: control target
= control target key end

     0   :  { %v281_v2 = vmov 0   ;;  %s354_s0 = inlined_call_operand.vmem [shape: f32[1,300], index: 0, kind: input, shape index: {}]   ;;  %s355_s1 = inlined_call_operand.vmem [shape: f32[50,1], index: 1, kind: input, shape index: {}]   ;;  %s356_s2 = inlined_call_operand.hbm [shape: f32[50,300], index: 2, kind: output, shape index: {}]  }
   0x1   :  { %v15_v0 = vld [vmem:[%s355_s1 + $0x10] sm:$0xff]  ;;  %v13_v1 = vld [vmem:[%s355_s1] sm:$0xff]  ;;  %211 = vset.pattern.permute.xlu1 %v281_v2  ;;  %210 = vset.pattern.permute.xlu0 %v281_v2 }
   0x2   :  { %v17_v3 = vld [vmem:[%s355_s1 + $0x20] sm:$0xff]  ;;  %39 = vperm.xlu1 %211, %v15_v0   ;;  %29 = vperm.xlu0 %210, %v13_v1  }
   0x3   :  { %7 = vsyncpa [#allocation3], 0  ;;  %212 = vset.pattern.permute.xlu2 %v281_v2  ;;  %v16_v4 = vld [vmem:[%s355_s1 + $0x18] sm:$0xff]  ;;  %v14_v5 = vld [vmem:[%s355_s1 + $0x8] sm:$0xff]  ;;  %s194_s27 = sshll.u32 %s356_s2, 4  ;;  %s283_s28 = smov 384   ;;  %s195_s27 = int_to_ptr.hbm [resolvable:$true] %s194_s27 }
   0x4   :  { %49 = vperm.xlu2 %212, %v17_v3   ;;  %v18_v6 = vld [vmem:[%s355_s1 + $0x28] sm:$0xff]  ;;  %v19_v7 = vld [vmem:[%s355_s1 + $0x30] sm:$0x3]  ;;  %v12_v8 = vld [vmem:[%s354_s0] sm:$0x7]  ;;  %s282_s0 = smov [#allocation2]  }
   0x5   :  { %v324_v9 = vperm.slane %v12_v8, 0  ;;  %v326_v10 = vperm.slane %v12_v8, 1  ;;  %v328_v11 = vperm.slane %v12_v8, 2  ;;  %s192_s1 = sshll.u32 %s282_s0, 4  ;;  %s284_s29 = smov 24   ;;  %s193_s1 = int_to_ptr.vmem [resolvable:$true] %s192_s1 }
   0xa   :  { %44 = vperm.xlu1 %211, %v16_v4   ;;  %34 = vperm.xlu0 %210, %v14_v5  }
   0xc   :  { %54 = vperm.xlu2 %212, %v18_v6  }
  0x12   :  { %59 = vperm.xlu0 %210, %v19_v7  }
  0x5e   :  { %v50_v12 = vpop.permute.xlu2 %49 }
  0x5f   :  { %v74_v13 = vsub.f32 %v324_v9, %v50_v12  ;;  %v75_v14 = vsub.f32 %v326_v10, %v50_v12  ;;  %v76_v15 = vsub.f32 %v328_v11, %v50_v12 }
  0x61   :  { %v95_v16 = vmul.f32 %v74_v13, %v74_v13  ;;  %v96_v17 = vmul.f32 %v75_v14, %v75_v14  ;;  %v97_v18 = vmul.f32 %v76_v15, %v76_v15 }
  0x63   :  { %v116_v19 = vmul.f32 -12.005001, %v95_v16  ;;  %v117_v20 = vmul.f32 -12.005001, %v96_v17  ;;  %v118_v21 = vmul.f32 -12.005001, %v97_v18 }
  0x65   :  { %v149_v22 = vmul.f32 1.442695, %v116_v19  ;;  %v151_v23 = vmul.f32 1.442695, %v117_v20  ;;  %v153_v24 = vmul.f32 1.442695, %v118_v21 }
  0x66   :  { %v55_v25 = vpop.permute.xlu2 %54 }
  0x67   :  { %213 = vpow2.f32 %v149_v22  ;;  %v77_v26 = vsub.f32 %v324_v9, %v55_v25  ;;  %v78_v27 = vsub.f32 %v326_v10, %v55_v25  ;;  %v79_v28 = vsub.f32 %v328_v11, %v55_v25 }
  0x68   :  { %215 = vpow2.f32 %v151_v23 }
  0x69   :  { %217 = vpow2.f32 %v153_v24  ;;  %v98_v29 = vmul.f32 %v77_v26, %v77_v26  ;;  %v99_v30 = vmul.f32 %v78_v27, %v78_v27  ;;  %v100_v31 = vmul.f32 %v79_v28, %v79_v28 }
  0x6b   :  { %v119_v32 = vmul.f32 -12.005001, %v98_v29  ;;  %v120_v33 = vmul.f32 -12.005001, %v99_v30  ;;  %v121_v34 = vmul.f32 -12.005001, %v100_v31 }
  0x6d   :  { %v214_v35 = vpop.eup %213  ;;  %v155_v36 = vmul.f32 1.442695, %v119_v32  ;;  %v157_v37 = vmul.f32 1.442695, %v120_v33  ;;  %v159_v38 = vmul.f32 1.442695, %v121_v34 }
  0x6e   :  { %v216_v39 = vpop.eup %215  ;;  %179 = vst [vmem:[#allocation2 + $0x60] sm:$0xff] %v214_v35 }
  0x6f   :  { %v218_v40 = vpop.eup %217  ;;  %180 = vst [vmem:[#allocation2 + $0x68] sm:$0xff] %v216_v39  ;;  %219 = vpow2.f32 %v155_v36 }
  0x70   :  { %181 = vst [vmem:[#allocation2 + $0x70] sm:$0xff] %v218_v40  ;;  %221 = vpow2.f32 %v157_v37 }
  0x71   :  { %223 = vpow2.f32 %v159_v38 }
  0x74   :  { %v40_v41 = vpop.permute.xlu1 %39  ;;  %v30_v42 = vpop.permute.xlu0 %29 }
  0x75   :  { %v220_v43 = vpop.eup %219  ;;  %v68_v44 = vsub.f32 %v324_v9, %v40_v41  ;;  %v69_v45 = vsub.f32 %v326_v10, %v40_v41  ;;  %v70_v46 = vsub.f32 %v328_v11, %v40_v41  ;;  %v62_v47 = vsub.f32 %v324_v9, %v30_v42 }
  0x76   :  { %v222_v48 = vpop.eup %221  ;;  %v63_v49 = vsub.f32 %v326_v10, %v30_v42  ;;  %v64_v50 = vsub.f32 %v328_v11, %v30_v42  ;;  %182 = vst [vmem:[#allocation2 + $0x78] sm:$0xff] %v220_v43 }
  0x77   :  { %v224_v51 = vpop.eup %223  ;;  %v89_v52 = vmul.f32 %v68_v44, %v68_v44  ;;  %v90_v53 = vmul.f32 %v69_v45, %v69_v45  ;;  %v91_v54 = vmul.f32 %v70_v46, %v70_v46  ;;  %v83_v55 = vmul.f32 %v62_v47, %v62_v47  ;;  %183 = vst [vmem:[#allocation2 + $0x80] sm:$0xff] %v222_v48 }
  0x78   :  { %v84_v56 = vmul.f32 %v63_v49, %v63_v49  ;;  %v85_v57 = vmul.f32 %v64_v50, %v64_v50  ;;  %184 = vst [vmem:[#allocation2 + $0x88] sm:$0xff] %v224_v51 }
  0x79   :  { %v110_v58 = vmul.f32 -12.005001, %v89_v52  ;;  %v111_v59 = vmul.f32 -12.005001, %v90_v53  ;;  %v112_v60 = vmul.f32 -12.005001, %v91_v54 }
  0x7a   :  { %v104_v61 = vmul.f32 -12.005001, %v83_v55  ;;  %v105_v62 = vmul.f32 -12.005001, %v84_v56  ;;  %v106_v63 = vmul.f32 -12.005001, %v85_v57 }
  0x7b   :  { %v137_v0 = vmul.f32 1.442695, %v110_v58  ;;  %v139_v1 = vmul.f32 1.442695, %v111_v59  ;;  %v141_v2 = vmul.f32 1.442695, %v112_v60 }
  0x7c   :  { %v125_v3 = vmul.f32 1.442695, %v104_v61  ;;  %v127_v4 = vmul.f32 1.442695, %v105_v62  ;;  %v129_v5 = vmul.f32 1.442695, %v106_v63  ;;  %v45_v6 = vpop.permute.xlu1 %44  ;;  %v35_v7 = vpop.permute.xlu0 %34 }
  0x7d   :  { %225 = vpow2.f32 %v137_v0  ;;  %v71_v8 = vsub.f32 %v324_v9, %v45_v6  ;;  %v72_v12 = vsub.f32 %v326_v10, %v45_v6  ;;  %v73_v13 = vsub.f32 %v328_v11, %v45_v6 }
  0x7e   :  { %227 = vpow2.f32 %v139_v1  ;;  %v65_v14 = vsub.f32 %v324_v9, %v35_v7  ;;  %v66_v15 = vsub.f32 %v326_v10, %v35_v7  ;;  %v67_v16 = vsub.f32 %v328_v11, %v35_v7 }
  0x7f   :  { %229 = vpow2.f32 %v141_v2  ;;  %v92_v17 = vmul.f32 %v71_v8, %v71_v8  ;;  %v93_v18 = vmul.f32 %v72_v12, %v72_v12  ;;  %v94_v19 = vmul.f32 %v73_v13, %v73_v13 }
  0x80   :  { %231 = vpow2.f32 %v125_v3  ;;  %v86_v20 = vmul.f32 %v65_v14, %v65_v14  ;;  %v87_v21 = vmul.f32 %v66_v15, %v66_v15  ;;  %v88_v22 = vmul.f32 %v67_v16, %v67_v16 }
  0x81   :  { %233 = vpow2.f32 %v127_v4  ;;  %v113_v23 = vmul.f32 -12.005001, %v92_v17  ;;  %v114_v24 = vmul.f32 -12.005001, %v93_v18  ;;  %v115_v25 = vmul.f32 -12.005001, %v94_v19 }
  0x82   :  { %235 = vpow2.f32 %v129_v5  ;;  %v107_v26 = vmul.f32 -12.005001, %v86_v20  ;;  %v108_v27 = vmul.f32 -12.005001, %v87_v21  ;;  %v109_v28 = vmul.f32 -12.005001, %v88_v22 }
  0x83   :  { %v226_v29 = vpop.eup %225  ;;  %v143_v30 = vmul.f32 1.442695, %v113_v23  ;;  %v145_v31 = vmul.f32 1.442695, %v114_v24  ;;  %v147_v32 = vmul.f32 1.442695, %v115_v25 }
  0x84   :  { %v228_v33 = vpop.eup %227  ;;  %173 = vst [vmem:[#allocation2 + $0x30] sm:$0xff] %v226_v29  ;;  %v131_v34 = vmul.f32 1.442695, %v107_v26  ;;  %v60_v35 = vpop.permute.xlu0 %59  ;;  %v133_v37 = vmul.f32 1.442695, %v108_v27 }
  0x85   :  { %v230_v36 = vpop.eup %229  ;;  %174 = vst [vmem:[#allocation2 + $0x38] sm:$0xff] %v228_v33  ;;  %237 = vpow2.f32 %v143_v30  ;;  %v80_v38 = vsub.f32 %v324_v9, %v60_v35  ;;  %v81_v39 = vsub.f32 %v326_v10, %v60_v35  ;;  %v135_v41 = vmul.f32 1.442695, %v109_v28 }
  0x86   :  { %v232_v40 = vpop.eup %231  ;;  %175 = vst [vmem:[#allocation2 + $0x40] sm:$0xff] %v230_v36  ;;  %239 = vpow2.f32 %v145_v31  ;;  %v82_v42 = vsub.f32 %v328_v11, %v60_v35 }
  0x87   :  { %v234_v43 = vpop.eup %233  ;;  %167 = vst [vmem:[#allocation2] sm:$0xff] %v232_v40  ;;  %241 = vpow2.f32 %v147_v32  ;;  %v101_v44 = vmul.f32 %v80_v38, %v80_v38  ;;  %v102_v45 = vmul.f32 %v81_v39, %v81_v39 }
  0x88   :  { %v236_v46 = vpop.eup %235  ;;  %168 = vst [vmem:[#allocation2 + $0x8] sm:$0xff] %v234_v43  ;;  %243 = vpow2.f32 %v131_v34  ;;  %v103_v47 = vmul.f32 %v82_v42, %v82_v42 }
  0x89   :  { %169 = vst [vmem:[#allocation2 + $0x10] sm:$0xff] %v236_v46  ;;  %245 = vpow2.f32 %v133_v37  ;;  %v122_v9 = vmul.f32 -12.005001, %v101_v44  ;;  %v123_v48 = vmul.f32 -12.005001, %v102_v45 }
  0x8a   :  { %247 = vpow2.f32 %v135_v41  ;;  %v124_v10 = vmul.f32 -12.005001, %v103_v47 }
  0x8b   :  { %v238_v49 = vpop.eup %237  ;;  %v161_v50 = vmul.f32 1.442695, %v122_v9  ;;  %v163_v51 = vmul.f32 1.442695, %v123_v48 }
  0x8c   :  { %v240_v52 = vpop.eup %239  ;;  %176 = vst [vmem:[#allocation2 + $0x48] sm:$0xff] %v238_v49  ;;  %v165_v11 = vmul.f32 1.442695, %v124_v10 }
  0x8d   :  { %v242_v53 = vpop.eup %241  ;;  %177 = vst [vmem:[#allocation2 + $0x50] sm:$0xff] %v240_v52  ;;  %249 = vpow2.f32 %v161_v50 }
  0x8e   :  { %v244_v54 = vpop.eup %243  ;;  %178 = vst [vmem:[#allocation2 + $0x58] sm:$0xff] %v242_v53  ;;  %251 = vpow2.f32 %v163_v51 }
  0x8f   :  { %v246_v55 = vpop.eup %245  ;;  %170 = vst [vmem:[#allocation2 + $0x18] sm:$0xff] %v244_v54  ;;  %253 = vpow2.f32 %v165_v11 }
  0x90   :  { %v248_v56 = vpop.eup %247  ;;  %171 = vst [vmem:[#allocation2 + $0x20] sm:$0xff] %v246_v55 }
  0x91   :  { %172 = vst [vmem:[#allocation2 + $0x28] sm:$0xff] %v248_v56 }
  0x93   :  { %v250_v57 = vpop.eup %249 }
  0x94   :  { %v252_v58 = vpop.eup %251  ;;  %185 = vst [vmem:[#allocation2 + $0x90] sm:$0x3] %v250_v57 }
  0x95   :  { %v254_v59 = vpop.eup %253  ;;  %186 = vst [vmem:[#allocation2 + $0x98] sm:$0x3] %v252_v58 }
  0x96   :  { %187 = vst [vmem:[#allocation2 + $0xa0] sm:$0x3] %v254_v59 }
  0x97   :  { %200 = dma.vmem_to_hbm [thread:$0]  %s193_s1, 2688, %s195_s27, [#allocation3], %s283_s28, %s283_s28, %s284_s29  }
  0x98   :  { %279 = dma.done.wait [#allocation3], 2688  }
  0x99   :  { %280 = vsyncadd [#allocation3], 4294964608 }
  0x9a   :  { %205 = vsyncpa [#allocation3], 1 }

</bundles_post_ra>
